<compile_context>
chip_gen: v5e
topology: v5e:2x2
jax: 0.10.0
libtpu: 0.0.40
codegen_flags: <defaults>
</compile_context>

<pallas_src>
import functools
import math

import jax
import jax.numpy as jnp
from jax.experimental import pallas as pl
from jax.experimental.pallas import tpu as pltpu


def _round_up(x: int, m: int) -> int:
    return -(-x // m) * m


def _linearx3_kernel(x_ref, w1_ref, b1_ref, w2_ref, b2_ref, o_ref):
    # x tile: (TM, in_pad) already in compute dtype (bf16); weights bf16,
    # biases f32.  Both matmuls accumulate in f32 on the MXU.
    h = jnp.dot(x_ref[...], w1_ref[...], preferred_element_type=jnp.float32)
    h = h + b1_ref[...]                              # (1, in_pad) broadcast, f32
    h = jnp.maximum(h, 0.2 * h)                      # LeakyReLU(0.2), slope < 1
    y = jnp.dot(h.astype(w2_ref.dtype), w2_ref[...],
                preferred_element_type=jnp.float32)
    y = y + b2_ref[...]                              # (1, out_pad) broadcast, f32
    o_ref[...] = y.astype(o_ref.dtype)


def prepare_linearx3_params(w1, b1, w2, b2, compute_dtype=jnp.bfloat16):
    """Pad (to multiples of 128) and cast the parameters ONCE.

    w1: (in_ch, in_ch), w2: (in_ch, out_ch) — already transposed so the kernel
    computes x @ W.  Returns VMEM-layout-friendly padded arrays.
    """
    in_ch = w1.shape[0]
    out_ch = w2.shape[1]
    in_pad = _round_up(in_ch, 128)
    out_pad = _round_up(out_ch, 128)
    w1_p = (jnp.zeros((in_pad, in_pad), compute_dtype)
            .at[:in_ch, :in_ch].set(w1.astype(compute_dtype)))
    w2_p = (jnp.zeros((in_pad, out_pad), compute_dtype)
            .at[:in_ch, :out_ch].set(w2.astype(compute_dtype)))
    b1_p = (jnp.zeros((1, in_pad), jnp.float32)
            .at[0, :in_ch].set(b1.astype(jnp.float32)))
    b2_p = (jnp.zeros((1, out_pad), jnp.float32)
            .at[0, :out_ch].set(b2.astype(jnp.float32)))
    return w1_p, b1_p, w2_p, b2_p


def _pick_tm(m, in_pad, out_pad, x_bytes, o_bytes, c_bytes, tm_max):
    # Per-row VMEM cost of all tile-scoped buffers: double-buffered x tile,
    # f32 h + bf16 h copy, f32 y accumulator, double-buffered out tile.
    row_bytes = in_pad * (2 * x_bytes + 4 + c_bytes) + out_pad * (2 * o_bytes + 4)
    tm = (16 << 20) // max(row_bytes, 1)    # ~16 MiB budget for tile buffers
    tm = min(tm, tm_max)
    if m >= 64:
        # Keep >= 4 grid steps: megacore sharding (v7x) and double-buffer
        # overlap both need multiple steps to do anything.
        tm = min(tm, -(-m // 4))
    tm = max(16, min(tm, max(m, 16)))
    return _round_up(tm, 16)                # bf16 sublane packing


def linearx3(x, w1_p, b1_p, w2_p, b2_p, *, out_ch,
             compute_dtype=jnp.bfloat16, out_dtype=None, tm_max=2048):
    """x: (..., in_ch) -> (..., out_ch).  Params must come from
    prepare_linearx3_params (pre-padded to multiples of 128, pre-cast)."""
    in_ch = x.shape[-1]
    in_pad = w1_p.shape[0]
    out_pad = w2_p.shape[1]
    assert in_ch <= in_pad and out_ch <= out_pad
    out_dtype = x.dtype if out_dtype is None else out_dtype

    lead = x.shape[:-1]
    x2 = x.reshape(-1, in_ch)
    if x2.dtype != compute_dtype:
        x2 = x2.astype(compute_dtype)       # bf16 feed: halves x HBM traffic
    m = x2.shape[0]

    x_bytes = jnp.dtype(compute_dtype).itemsize
    o_bytes = jnp.dtype(out_dtype).itemsize
    c_bytes = jnp.dtype(w1_p.dtype).itemsize

    tm = _pick_tm(m, in_pad, out_pad, x_bytes, o_bytes, c_bytes, tm_max)
    m_pad = _round_up(m, tm)
    grid = (m_pad // tm,)

    # Only copy/pad x when actually needed (aligned inputs pass straight through).
    if (in_ch != in_pad) or (m != m_pad):
        x_p = jnp.zeros((m_pad, in_pad), compute_dtype).at[:m, :in_ch].set(x2)
    else:
        x_p = x2

    # VMEM budget: double-buffered x/out tiles + single-buffered resident
    # weights/biases + in-kernel temporaries (f32 h, bf16 h copy, f32 y acc).
    vmem_bytes = int(
        2 * tm * in_pad * x_bytes
        + 2 * tm * out_pad * o_bytes
        + (in_pad * in_pad + in_pad * out_pad) * c_bytes
        + 2 * (in_pad + out_pad) * 4
        + tm * (in_pad * (4 + c_bytes) + out_pad * 4)
        + (4 << 20)                          # Mosaic internal scratch headroom
    )
    try:
        info = pltpu.get_tpu_info()
        vmem_cap = int(getattr(info, "vmem_capacity_bytes", 64 << 20))
    except Exception:
        vmem_cap = 64 << 20
    vmem_bytes = min(vmem_bytes, int(0.75 * vmem_cap))

    cost = pl.CostEstimate(
        flops=2 * m_pad * in_pad * (in_pad + out_pad),
        transcendentals=0,
        bytes_accessed=int(
            m_pad * in_pad * x_bytes
            + (w1_p.size + w2_p.size) * c_bytes
            + (b1_p.size + b2_p.size) * 4
            + m_pad * out_pad * o_bytes
        ),
    )

    resident = functools.partial(pl.pallas_call)  # (readability no-op)
    out_arr = resident(
        _linearx3_kernel,
        out_shape=jax.ShapeDtypeStruct((m_pad, out_pad), out_dtype),
        grid=grid,
        in_specs=[
            # x: tiled over M, double-buffered by default.
            pl.BlockSpec((tm, in_pad), lambda i: (i, 0)),
            # Weights / biases: constant index_map + single buffer (resident).
            pl.BlockSpec((in_pad, in_pad), lambda i: (0, 0),
                         pipeline_mode=pl.Buffered(1)),
            pl.BlockSpec((1, in_pad), lambda i: (0, 0),
                         pipeline_mode=pl.Buffered(1)),
            pl.BlockSpec((in_pad, out_pad), lambda i: (0, 0),
                         pipeline_mode=pl.Buffered(1)),
            pl.BlockSpec((1, out_pad), lambda i: (0, 0),
                         pipeline_mode=pl.Buffered(1)),
        ],
        out_specs=pl.BlockSpec((tm, out_pad), lambda i: (i, 0)),
        compiler_params=pltpu.CompilerParams(
            dimension_semantics=("parallel",),
            vmem_limit_bytes=vmem_bytes,
        ),
        cost_estimate=cost,
    )(x_p, w1_p, b1_p, w2_p, b2_p)

    if (m != m_pad) or (out_ch != out_pad):
        out_arr = out_arr[:m, :out_ch]
    return out_arr.reshape(*lead, out_ch)


def init_linearx3_params(key, in_ch, out_ch, dtype=jnp.float32):
    """PyTorch-style init: U(-1/sqrt(fan_in), 1/sqrt(fan_in)).

    Weights are returned already transposed to (fan_in, fan_out) so the kernel
    computes x @ W directly.
    """
    k1, k2, k3, k4 = jax.random.split(key, 4)
    bound1 = 1.0 / math.sqrt(in_ch)
    w1 = jax.random.uniform(k1, (in_ch, in_ch), dtype, -bound1, bound1)
    b1 = jax.random.uniform(k2, (in_ch,), dtype, -bound1, bound1)
    bound2 = 1.0 / math.sqrt(in_ch)
    w2 = jax.random.uniform(k3, (in_ch, out_ch), dtype, -bound2, bound2)
    b2 = jax.random.uniform(k4, (out_ch,), dtype, -bound2, bound2)
    return w1, b1, w2, b2


def _reference(x, w1, b1, w2, b2):
    h = x @ w1 + b1
    h = jnp.where(h > 0, h, 0.2 * h)
    return h @ w2 + b2


if __name__ == "__main__":
    batch, seq, in_ch, out_ch = 2, 8, 32, 16

    key = jax.random.PRNGKey(0)
    kx, kp = jax.random.split(key)
    x = jax.random.normal(kx, (batch, seq, in_ch), jnp.float32)
    w1, b1, w2, b2 = init_linearx3_params(kp, in_ch, out_ch)

    # Pad + cast parameters ONCE (not per call).
    w1_p, b1_p, w2_p, b2_p = prepare_linearx3_params(w1, b1, w2, b2)

    fwd = jax.jit(functools.partial(linearx3, out_ch=out_ch))
    y = jax.block_until_ready(fwd(x, w1_p, b1_p, w2_p, b2_p))

    y_ref = _reference(x, w1, b1, w2, b2)
    assert y.shape == (batch, seq, out_ch), y.shape
    # bf16 MXU inputs with f32 accumulation -> loosened tolerance vs f32 ref.
    assert jnp.allclose(y, y_ref, atol=2e-2, rtol=2e-2), "mismatch vs reference"

    print("KERNEL_OK")
</pallas_src>

<mosaic_0001>
module attributes {stable_mosaic.version = 11 : i64} {
  func.func @_linearx3_kernel(%arg0: i32, %arg1: memref<16x128xbf16, #tpu.memory_space<vmem>>, %arg2: memref<128x128xbf16, #tpu.memory_space<vmem>>, %arg3: memref<1x128xf32, #tpu.memory_space<vmem>>, %arg4: memref<128x128xbf16, #tpu.memory_space<vmem>>, %arg5: memref<1x128xf32, #tpu.memory_space<vmem>>, %arg6: memref<16x128xf32, #tpu.memory_space<vmem>>) attributes {dimension_semantics = [#tpu.dimension_semantics<parallel>], iteration_bounds = array<i64: 1>, scalar_prefetch = 0 : i64, scratch_operands = 0 : i64, tpu.core_type = #tpu.core_type<tc>, window_params = [{transform_indices = @transform_0, window_bounds = array<i64: 16, 128>}, {pipeline_mode = #tpu.pipeline_mode<synchronous>, transform_indices = @transform_1, window_bounds = array<i64: 128, 128>}, {pipeline_mode = #tpu.pipeline_mode<synchronous>, transform_indices = @transform_2, window_bounds = array<i64: 1, 128>}, {pipeline_mode = #tpu.pipeline_mode<synchronous>, transform_indices = @transform_3, window_bounds = array<i64: 128, 128>}, {pipeline_mode = #tpu.pipeline_mode<synchronous>, transform_indices = @transform_4, window_bounds = array<i64: 1, 128>}, {transform_indices = @transform_5, window_bounds = array<i64: 16, 128>}]} {
    %c0 = arith.constant 0 : index
    %c0_0 = arith.constant 0 : index
    %0 = vector.load %arg1[%c0, %c0_0] : memref<16x128xbf16, #tpu.memory_space<vmem>>, vector<16x128xbf16>
    %c0_1 = arith.constant 0 : index
    %c0_2 = arith.constant 0 : index
    %1 = vector.load %arg2[%c0_1, %c0_2] : memref<128x128xbf16, #tpu.memory_space<vmem>>, vector<128x128xbf16>
    %cst = arith.constant dense<0.000000e+00> : vector<16x128xf32>
    %2 = tpu.matmul %0, %1, %cst {dimension_numbers = #tpu.dot_dimension_numbers<[1], [0], [0], [1], [0, 0, 1, 1], [], []>} : vector<16x128xbf16>, vector<128x128xbf16>, vector<16x128xf32> -> vector<16x128xf32>
    %c0_3 = arith.constant 0 : index
    %c0_4 = arith.constant 0 : index
    %3 = vector.load %arg3[%c0_3, %c0_4] : memref<1x128xf32, #tpu.memory_space<vmem>>, vector<1x128xf32>
    %4 = vector.broadcast %3 : vector<1x128xf32> to vector<16x128xf32>
    %5 = arith.addf %2, %4 : vector<16x128xf32>
    %cst_5 = arith.constant 2.000000e-01 : f32
    %6 = vector.broadcast %cst_5 : f32 to vector<16x128xf32>
    %7 = arith.mulf %6, %5 : vector<16x128xf32>
    %8 = arith.maximumf %5, %7 : vector<16x128xf32>
    %9 = arith.truncf %8 : vector<16x128xf32> to vector<16x128xbf16>
    %c0_6 = arith.constant 0 : index
    %c0_7 = arith.constant 0 : index
    %10 = vector.load %arg4[%c0_6, %c0_7] : memref<128x128xbf16, #tpu.memory_space<vmem>>, vector<128x128xbf16>
    %cst_8 = arith.constant dense<0.000000e+00> : vector<16x128xf32>
    %11 = tpu.matmul %9, %10, %cst_8 {dimension_numbers = #tpu.dot_dimension_numbers<[1], [0], [0], [1], [0, 0, 1, 1], [], []>} : vector<16x128xbf16>, vector<128x128xbf16>, vector<16x128xf32> -> vector<16x128xf32>
    %c0_9 = arith.constant 0 : index
    %c0_10 = arith.constant 0 : index
    %12 = vector.load %arg5[%c0_9, %c0_10] : memref<1x128xf32, #tpu.memory_space<vmem>>, vector<1x128xf32>
    %13 = vector.broadcast %12 : vector<1x128xf32> to vector<16x128xf32>
    %14 = arith.addf %11, %13 : vector<16x128xf32>
    %c0_11 = arith.constant 0 : index
    %c0_12 = arith.constant 0 : index
    %15 = vector.load %arg6[%c0_11, %c0_12] : memref<16x128xf32, #tpu.memory_space<vmem>>, vector<16x128xf32>
    tpu.vector_store %arg6[%c0_11, %c0_12], %14 {strides = array<i32>} : memref<16x128xf32, #tpu.memory_space<vmem>>, vector<16x128xf32>,
    return
  }
  func.func @transform_0(%arg0: i32) -> (i32, i32) {
    %c0_i32 = arith.constant 0 : i32
    %c0_i32_0 = arith.constant 0 : i32
    return %arg0, %c0_i32 : i32, i32
  }
  func.func @transform_1(%arg0: i32) -> (i32, i32) {
    %c0_i32 = arith.constant 0 : i32
    %c0_i32_0 = arith.constant 0 : i32
    %c0_i32_1 = arith.constant 0 : i32
    return %c0_i32, %c0_i32_0 : i32, i32
  }
  func.func @transform_2(%arg0: i32) -> (i32, i32) {
    %c0_i32 = arith.constant 0 : i32
    %c0_i32_0 = arith.constant 0 : i32
    %c0_i32_1 = arith.constant 0 : i32
    return %c0_i32, %c0_i32_0 : i32, i32
  }
  func.func @transform_3(%arg0: i32) -> (i32, i32) {
    %c0_i32 = arith.constant 0 : i32
    %c0_i32_0 = arith.constant 0 : i32
    %c0_i32_1 = arith.constant 0 : i32
    return %c0_i32, %c0_i32_0 : i32, i32
  }
  func.func @transform_4(%arg0: i32) -> (i32, i32) {
    %c0_i32 = arith.constant 0 : i32
    %c0_i32_0 = arith.constant 0 : i32
    %c0_i32_1 = arith.constant 0 : i32
    return %c0_i32, %c0_i32_0 : i32, i32
  }
  func.func @transform_5(%arg0: i32) -> (i32, i32) {
    %c0_i32 = arith.constant 0 : i32
    %c0_i32_0 = arith.constant 0 : i32
    return %arg0, %c0_i32 : i32, i32
  }
}

</mosaic_0001>

<bundles_post_ra>
// kernel: linearx3.1
= control target key start
LH: loop header
LB: loop body
LE: loop exit
PB: predicated region body
PF: predicated region fallthrough
CT: control target
= control target key end

     0   :  { %10 = vsyncpa [#allocation3], 0  ;;  %s435_s0 = inlined_call_operand.vmem [shape: bf16[16,128], index: 0, kind: input, shape index: {}]   ;;  %s436_s1 = inlined_call_operand.hbm [shape: bf16[128,128], index: 1, kind: input, shape index: {}]   ;;  %s437_s2 = inlined_call_operand.vmem [shape: f32[1,128], index: 2, kind: input, shape index: {}]   ;;  %s438_s3 = inlined_call_operand.hbm [shape: bf16[128,128], index: 3, kind: input, shape index: {}]   ;;  %s439_s4 = inlined_call_operand.vmem [shape: f32[1,128], index: 4, kind: input, shape index: {}]   ;;  %s440_s5 = inlined_call_operand.vmem [shape: f32[16,128], index: 5, kind: output, shape index: {}]  }
   0x1   :  { %s18_s20 = sshll.u32 %s436_s1, 4  ;;  %s19_s20 = int_to_ptr.hbm [resolvable:$true] %s18_s20 }
   0x2   :  { %11 = vsyncpa [#allocation5], 0  ;;  %s380_s21 = smov [#allocation2]   ;;  %s33_s25 = sshll.u32 %s438_s3, 4  ;;  %s34_s25 = int_to_ptr.hbm [resolvable:$true] %s33_s25 }
   0x3   :  { %s20_s22 = sshll.u32 %s380_s21, 4  ;;  %s381_s26 = smov 64   ;;  %s21_s22 = int_to_ptr.vmem [resolvable:$true] %s20_s22 }
   0x4   :  { %s382_s27 = smov 4   ;;  %s383_s28 = smov [#allocation4]  }
   0x5   :  { %26 = dma.hbm_to_vmem [thread:$0]  %s19_s20, 1024, %s21_s22, [#allocation3], %s381_s26, %s381_s26, %s382_s27  }
   0x6   :  { %s35_s29 = sshll.u32 %s383_s28, 4  ;;  %s36_s29 = int_to_ptr.vmem [resolvable:$true] %s35_s29 }
   0x7   :  { %41 = dma.hbm_to_vmem [thread:$0]  %s34_s25, 1024, %s36_s29, [#allocation5], %s381_s26, %s381_s26, %s382_s27  }
   0x8   :  { %376 = dma.done.wait [#allocation3], 1024  }
   0x9   :  { %377 = vsyncadd [#allocation3], 4294966272 }
   0xa   :  { %378 = dma.done.wait [#allocation5], 1024  }
   0xb   :  { %379 = vsyncadd [#allocation5], 4294966272  ;;  %v313_v0 = vld [vmem:[#allocation2 + $0x38] sm:$0xff]  ;;  %v312_v1 = vld [vmem:[#allocation2 + $0x30] sm:$0xff] }
   0xc   :  { %128 = vmatpush.bf16.msra.mxu0 %v313_v0  ;;  %v321_v2 = vld [vmem:[#allocation4 + $0x38] sm:$0xff]  ;;  %v320_v3 = vld [vmem:[#allocation4 + $0x30] sm:$0xff]  ;;  %v311_v4 = vld [vmem:[#allocation2 + $0x28] sm:$0xff] }
   0xd   :  { %215 = vmatpush.bf16.msra.mxu1 %v321_v2  ;;  %v319_v5 = vld [vmem:[#allocation4 + $0x28] sm:$0xff]  ;;  %v310_v6 = vld [vmem:[#allocation2 + $0x20] sm:$0xff]  ;;  %v309_v8 = vld [vmem:[#allocation2 + $0x18] sm:$0xff] }
   0xe   :  { %v318_v7 = vld [vmem:[#allocation4 + $0x20] sm:$0xff]  ;;  %v308_v9 = vld [vmem:[#allocation2 + $0x10] sm:$0xff]  ;;  %v307_v10 = vld [vmem:[#allocation2 + $0x8] sm:$0xff] }
   0xf   :  { %v306_v11 = vld [vmem:[#allocation2] sm:$0xff]  ;;  %v317_v13 = vld [vmem:[#allocation4 + $0x18] sm:$0xff]  ;;  %v316_v14 = vld [vmem:[#allocation4 + $0x10] sm:$0xff] }
  0x10   :  { %129 = vmatpush.bf16.msra.mxu0 %v312_v1  ;;  %v305_v12 = vld [vmem:[%s435_s0] sm:$0xff]  ;;  %v315_v15 = vld [vmem:[#allocation4 + $0x8] sm:$0xff] }
  0x11   :  { %216 = vmatpush.bf16.msra.mxu1 %v320_v3  ;;  %v314_v16 = vld [vmem:[#allocation4] sm:$0xff] }
  0x12   :  { %v326_v18 = vld [vmem:[%s437_s2] ss:$0 sm:$0xff] }
  0x13   :  { %v327_v27 = vld [vmem:[%s439_s4] ss:$0 sm:$0xff] }
  0x14   :  { %130 = vmatpush.bf16.msra.mxu0 %v311_v4 }
  0x15   :  { %217 = vmatpush.bf16.msra.mxu1 %v319_v5 }
  0x18   :  { %131 = vmatpush.bf16.msra.mxu0 %v310_v6 }
  0x19   :  { %218 = vmatpush.bf16.msra.mxu1 %v318_v7 }
  0x1c   :  { %132 = vmatpush.bf16.msra.mxu0 %v309_v8 }
  0x1d   :  { %219 = vmatpush.bf16.msra.mxu1 %v317_v13 }
  0x20   :  { %133 = vmatpush.bf16.msra.mxu0 %v308_v9 }
  0x21   :  { %220 = vmatpush.bf16.msra.mxu1 %v316_v14 }
  0x24   :  { %134 = vmatpush.bf16.msra.mxu0 %v307_v10 }
  0x25   :  { %221 = vmatpush.bf16.msra.mxu1 %v315_v15 }
  0x28   :  { %135 = vmatpush.bf16.msra.mxu0 %v306_v11 }
  0x29   :  { %222 = vmatpush.bf16.msra.mxu1 %v314_v16 }
  0x2b   :  { %136 = vmatmul.bf16.vlgmr.msra.gmra.mxu0 %v305_v12 }
  0xa8   :  { %v137_v17 = vpop.f32.mrf.mxu0 }
  0xa9   :  { %v138_v19 = vadd.f32 %v326_v18, %v137_v17 }
  0xab   :  { %v142_v21 = vmul.f32 0.2, %v138_v19 }
  0xad   :  { %v144_v24 = vmax.f32 %v138_v19, %v142_v21 }
  0xb0   :  { %v139_v20 = vpop.f32.mrf.mxu0 }
  0xb1   :  { %v140_v22 = vadd.f32 %v326_v18, %v139_v20 }
  0xb3   :  { %v143_v23 = vmul.f32 0.2, %v140_v22 }
  0xb5   :  { %v145_v25 = vmax.f32 %v140_v22, %v143_v23 }
  0xb7   :  { %v146_v26 = vpack.c.bf16 %v145_v25, %v144_v24 }
  0xb9   :  { %223 = vmatmul.bf16.vlgmr.msra.gmra.mxu1 %v146_v26 }
 0x136   :  { %v224_v28 = vpop.f32.mrf.mxu1 }
 0x137   :  { %v225_v29 = vadd.f32 %v327_v27, %v224_v28 }
 0x139   :  { %229 = vst [vmem:[%s440_s5] sm:$0xff] %v225_v29 }
 0x13e   :  { %v226_v30 = vpop.f32.mrf.mxu1 }
 0x13f   :  { %v227_v31 = vadd.f32 %v327_v27, %v226_v30 }
 0x141   :  { %230 = vst [vmem:[%s440_s5 + $0x8] sm:$0xff] %v227_v31 }
 0x142   :  { %235 = vsyncpa [#allocation3], 1 }
 0x143   :  { %236 = vsyncpa [#allocation5], 1 }

</bundles_post_ra>
